<compile_context>
chip_gen: v7x
topology: tpu7x:2x2x1
jax: 0.10.0
libtpu: 0.0.40
codegen_flags: <defaults>
</compile_context>

<pallas_src>
import jax
import jax.numpy as jnp
from jax.experimental import pallas as pl
from jax.experimental.pallas import tpu as pltpu

_EPS = 1e-12                 # F.normalize default eps (clamp on the norm)
_EPS_SQ = _EPS * _EPS        # equivalent clamp on the sum of squares
_SUBLANE = 8
_LANE = 128


def _round_down(x, m):
    return (x // m) * m


def _round_up(x, m):
    return ((x + m - 1) // m) * m


def _tpu_budgets():
    """Generation-aware VMEM limits.

    Returns (vmem_limit_bytes, live_block_budget_bytes, num_tensorcores)."""
    vmem_cap = 64 << 20
    num_cores = 1
    try:
        info = pltpu.get_tpu_info()
        vmem_cap = int(getattr(info, "vmem_capacity_bytes", vmem_cap) or vmem_cap)
        num_cores = 0
        for name in ("num_cores", "tensorcores_per_chip", "num_tensorcores",
                     "core_count"):
            val = getattr(info, name, None)
            if val:
                num_cores = int(val)
                break
        if not num_cores:
            # Heuristic: v7x has 64 MiB VMEM per TC and 2 TCs; v5e/v6e have
            # 128 MiB and a single TC.
            num_cores = 2 if vmem_cap <= (64 << 20) else 1
    except Exception:  # conservative fallback if the query is unavailable
        vmem_cap, num_cores = 64 << 20, 1
    # Leave headroom below physical VMEM for in-kernel temporaries and the
    # compiler's own scratch: ~48 MiB on v7x, ~96 MiB on v5e/v6e.
    vmem_limit = min((vmem_cap * 3) // 4, 96 << 20)
    live_budget = max(vmem_limit // 3, 4 << 20)
    return vmem_limit, live_budget, num_cores


def _pick_col_tile(n_cols, bytes_per_col, budget):
    """Lane (class) tile: full extent or a multiple of 128 (lane-dense stores)."""
    if n_cols <= _LANE:
        return n_cols
    tile = max(_LANE, _round_down(budget // max(bytes_per_col, 1), _LANE))
    return n_cols if tile >= n_cols else tile


def _pick_row_tile(n_rows, bytes_per_row, budget, num_cores):
    """Sublane (row) tile: multiple of 8 (or full extent) sized so the live
    (double-buffered) blocks + in-kernel temporaries fit `budget`."""
    if n_rows <= _SUBLANE:
        return n_rows
    tile = min(n_rows, max(_SUBLANE, budget // max(bytes_per_row, 1)))
    tile = max(_SUBLANE, _round_down(tile, _SUBLANE))
    if tile >= n_rows:
        tile = n_rows
        # Only split when the (parallel) row axis would otherwise be a single
        # grid step AND there are >=2 TensorCores to shard it across; on 1-TC
        # chips halving only adds per-step overhead.
        if num_cores >= 2 and n_rows >= 2 * _SUBLANE:
            tile = max(_SUBLANE, _round_down(pl.cdiv(n_rows, 2), _SUBLANE))
    return tile


# -----------------------------------------------------------------------------
# Text pre-normalization:  out = exp(logit_scale) * txt / max(||txt||, eps)
# (done once; exp(logit_scale) folded into the per-row inverse norm; bf16 out)
# -----------------------------------------------------------------------------
def _text_prenorm_kernel(scale_ref, txt_ref, o_ref):
    t = txt_ref[...].astype(jnp.float32)
    inv = jax.lax.rsqrt(
        jnp.maximum(jnp.sum(t * t, axis=-1, keepdims=True), _EPS_SQ))
    o_ref[...] = (t * (inv * scale_ref[0])).astype(o_ref.dtype)


def _prenormalize_text(text_features, logit_scale, vmem_limit, live_budget):
    c, d = text_features.shape
    c_pad = _round_up(c, _LANE)
    if c_pad != c:
        # Zero rows normalize to zero vectors (sum_sq clamped at eps^2, 0*rsqrt
        # stays 0), so the padded logit columns are exactly 0 and sliced away.
        text_features = jnp.pad(text_features, ((0, c_pad - c), (0, 0)))
    scale = jnp.exp(jnp.asarray(logit_scale, jnp.float32)).reshape(1)

    # Live bytes per text row: f32 input (x2 buffers) + bf16 output (x2) + temps.
    bytes_per_row = (2 * 4 + 2 * 2 + 2 * 4) * d
    tr = _pick_row_tile(c_pad, bytes_per_row, live_budget, 1)
    grid = (pl.cdiv(c_pad, tr),)

    return pl.pallas_call(
        _text_prenorm_kernel,
        out_shape=jax.ShapeDtypeStruct((c_pad, d), jnp.bfloat16),
        grid_spec=pltpu.PrefetchScalarGridSpec(
            num_scalar_prefetch=0,
            grid=grid,
            in_specs=[
                pl.BlockSpec(memory_space=pltpu.MemorySpace.SMEM),  # exp(scale)
                pl.BlockSpec((tr, d), lambda i: (i, 0)),
            ],
            out_specs=pl.BlockSpec((tr, d), lambda i: (i, 0)),
        ),
        compiler_params=pltpu.CompilerParams(
            dimension_semantics=("parallel",),
            vmem_limit_bytes=vmem_limit,
        ),
    )(scale, text_features)


# -----------------------------------------------------------------------------
# Fused logits:  logits = normalize(adapter?(img)) @ text_norm^T
# (text_norm already carries exp(logit_scale); image tile normalized once per
#  row-block and cached in bf16 VMEM scratch)
# -----------------------------------------------------------------------------
def _fused_logits_kernel(img_ref, txt_ref, o_ref, img_cache):
    @pl.when(pl.program_id(1) == 0)
    def _():
        x = img_ref[...].astype(jnp.float32)
        inv = jax.lax.rsqrt(
            jnp.maximum(jnp.sum(x * x, axis=-1, keepdims=True), _EPS_SQ))
        img_cache[...] = (x * inv).astype(jnp.bfloat16)
    sim = jax.lax.dot_general(
        img_cache[...], txt_ref[...],
        (((1,), (1,)), ((), ())), preferred_element_type=jnp.float32)
    o_ref[...] = sim.astype(o_ref.dtype)


def _fused_adapter_logits_kernel(img_ref, txt_ref, w1_ref, w2_ref, o_ref,
                                 img_cache):
    @pl.when(pl.program_id(1) == 0)
    def _():
        x = img_ref[...].astype(jnp.float32)
        # VisionAdapter residual: x + ReLU(ReLU(x @ W1^T) @ W2^T)
        # bf16 MXU operands, f32 accumulation.
        hid = jax.lax.dot_general(
            x.astype(jnp.bfloat16), w1_ref[...],
            (((1,), (1,)), ((), ())), preferred_element_type=jnp.float32)
        hid = jnp.maximum(hid, 0.0)
        res = jax.lax.dot_general(
            hid.astype(jnp.bfloat16), w2_ref[...],
            (((1,), (1,)), ((), ())), preferred_element_type=jnp.float32)
        x = x + jnp.maximum(res, 0.0)
        # Row-wise L2 normalization: f32 sum-of-squares + rsqrt, cached as bf16.
        inv = jax.lax.rsqrt(
            jnp.maximum(jnp.sum(x * x, axis=-1, keepdims=True), _EPS_SQ))
        img_cache[...] = (x * inv).astype(jnp.bfloat16)
    sim = jax.lax.dot_general(
        img_cache[...], txt_ref[...],
        (((1,), (1,)), ((), ())), preferred_element_type=jnp.float32)
    o_ref[...] = sim.astype(o_ref.dtype)


def _fused_logits(image_features, text_norm, w1, w2, use_adapter,
                  vmem_limit, live_budget, num_cores):
    b, d = image_features.shape
    c_pad, d2 = text_norm.shape
    assert d == d2, "image/text feature dims must match"
    h = int(w1.shape[0]) if use_adapter else 0

    # Column (class) tile: text block is bf16, double-buffered.
    tn = _pick_col_tile(c_pad, 2 * d * 2, max(live_budget // 4, 2 * _LANE * d * 2))
    # Fixed resident bytes: text block + adapter weights (bf16, x2 buffers each).
    fixed = 2 * tn * d * 2 + (2 * 2 * (h * d * 2) if use_adapter else 0)
    # Per image-row bytes: f32 input (x2), f32 output slab (x2), bf16 cache,
    # in-kernel f32 temporaries (x, x*x, res [+ hid]).
    per_row = 2 * d * 4 + 2 * tn * 4 + d * 2 + 3 * d * 4 + (h * 4 if use_adapter else 0)
    tm = _pick_row_tile(b, per_row, max(live_budget - fixed, per_row * _SUBLANE),
                        num_cores)
    grid = (pl.cdiv(b, tm), pl.cdiv(c_pad, tn))

    if use_adapter:
        kernel = _fused_adapter_logits_kernel
        in_specs = [
            pl.BlockSpec((tm, d), lambda i, j: (i, 0)),      # image features (f32)
            pl.BlockSpec((tn, d), lambda i, j: (j, 0)),      # pre-normalized text (bf16)
            pl.BlockSpec((h, d), lambda i, j: (0, 0)),       # W1 (bf16, resident)
            pl.BlockSpec((d, h), lambda i, j: (0, 0)),       # W2 (bf16, resident)
        ]
        operands = (image_features, text_norm,
                    w1.astype(jnp.bfloat16), w2.astype(jnp.bfloat16))
    else:
        kernel = _fused_logits_kernel
        in_specs = [
            pl.BlockSpec((tm, d), lambda i, j: (i, 0)),
            pl.BlockSpec((tn, d), lambda i, j: (j, 0)),
        ]
        operands = (image_features, text_norm)

    return pl.pallas_call(
        kernel,
        out_shape=jax.ShapeDtypeStruct((b, c_pad), image_features.dtype),
        grid_spec=pltpu.PrefetchScalarGridSpec(
            num_scalar_prefetch=0,
            grid=grid,
            in_specs=in_specs,
            out_specs=pl.BlockSpec((tm, tn), lambda i, j: (i, j)),
            scratch_shapes=[pltpu.VMEM((tm, d), jnp.bfloat16)],   # normalized img tile
        ),
        compiler_params=pltpu.CompilerParams(
            # j carries the cached normalized image tile across steps -> it must
            # stay sequential ("arbitrary"); only the row axis is megacore-parallel.
            dimension_semantics=("parallel", "arbitrary"),
            vmem_limit_bytes=vmem_limit,
        ),
    )(*operands)


# -----------------------------------------------------------------------------
# Forward wrapper (downstream of the pretrained backbones)
# -----------------------------------------------------------------------------
def custom_biomedclip_forward(image_features, text_features, logit_scale,
                              adapter_w1=None, adapter_w2=None,
                              use_adapter=False):
    """CustomBiomedCLIP.forward given precomputed backbone features.

    image_features: (B, D) output of the BiomedCLIP image encoder.
    text_features:  (C, D) output of the text encoder over the learned prompts.
    logit_scale:    scalar learnable parameter (exp() applied, as in CLIP).
    """
    # TODO(synk): the ViT image encoder, the BERT-style text transformer
    # (+ pooler, proj) and the BiomedPromptLearner tokenizer/embedding lookup
    # require pretrained BiomedCLIP weights and are not re-implemented here.
    n_cls = text_features.shape[0]
    vmem_limit, live_budget, num_cores = _tpu_budgets()
    text_norm = _prenormalize_text(text_features, logit_scale,
                                   vmem_limit, live_budget)
    logits = _fused_logits(image_features, text_norm, adapter_w1, adapter_w2,
                           use_adapter, vmem_limit, live_budget, num_cores)
    if logits.shape[1] != n_cls:
        logits = logits[:, :n_cls]       # drop lane-padding of the class dim
    return logits


# -----------------------------------------------------------------------------
# Pure-JAX reference (mirrors the PyTorch forward, f32 throughout)
# -----------------------------------------------------------------------------
def _reference_forward(image_features, text_features, logit_scale,
                       w1=None, w2=None, use_adapter=False):
    x = image_features.astype(jnp.float32)
    if use_adapter:
        hid = jnp.maximum(x @ w1.T, 0.0)
        res = jnp.maximum(hid @ w2.T, 0.0)
        x = x + res
    x_n = x / jnp.maximum(jnp.sqrt(jnp.sum(x * x, axis=-1, keepdims=True)), _EPS)
    t = text_features.astype(jnp.float32)
    t_n = t / jnp.maximum(jnp.sqrt(jnp.sum(t * t, axis=-1, keepdims=True)), _EPS)
    return (jnp.exp(jnp.asarray(logit_scale, jnp.float32)) * (x_n @ t_n.T)).astype(
        image_features.dtype)


if __name__ == "__main__":
    key = jax.random.PRNGKey(0)
    k_img, k_txt, k_w1, k_w2 = jax.random.split(key, 4)

    # Small but lane-dense shapes consistent with BiomedCLIP (projection dim 512).
    batch, n_cls, feat_dim = 8, 16, 512
    bottleneck = feat_dim // 4            # VisionAdapter reduction=4

    # Stand-ins for the untranslatable backbone outputs / parameters.
    image_features = jax.random.normal(k_img, (batch, feat_dim), jnp.float32)
    text_features = jax.random.normal(k_txt, (n_cls, feat_dim), jnp.float32)
    w1 = 0.02 * jax.random.normal(k_w1, (bottleneck, feat_dim), jnp.float32)
    w2 = 0.02 * jax.random.normal(k_w2, (feat_dim, bottleneck), jnp.float32)
    logit_scale = jnp.log(jnp.float32(1.0 / 0.07))   # CLIP logit_scale init

    # Path 1: use_adapter=False (encode_image)
    logits = custom_biomedclip_forward(image_features, text_features, logit_scale)
    logits = jax.block_until_ready(logits)
    ref = _reference_forward(image_features, text_features, logit_scale)
    assert logits.shape == (batch, n_cls)
    assert bool(jnp.all(jnp.isfinite(logits)))
    assert jnp.allclose(logits, ref, atol=5e-2, rtol=5e-2), "mismatch (no adapter)"

    # Path 2: use_adapter=True (encode_image_via_adapter)
    logits_a = custom_biomedclip_forward(
        image_features, text_features, logit_scale,
        adapter_w1=w1, adapter_w2=w2, use_adapter=True)
    logits_a = jax.block_until_ready(logits_a)
    ref_a = _reference_forward(image_features, text_features, logit_scale,
                               w1, w2, use_adapter=True)
    assert logits_a.shape == (batch, n_cls)
    assert bool(jnp.all(jnp.isfinite(logits_a)))
    assert jnp.allclose(logits_a, ref_a, atol=5e-2, rtol=5e-2), "mismatch (adapter)"

    print("KERNEL_OK")
</pallas_src>

<mosaic_0001>
module attributes {stable_mosaic.version = 11 : i64} {
  func.func @_text_prenorm_kernel(%arg0: i32, %arg1: memref<1xf32, #tpu.memory_space<smem>>, %arg2: memref<128x512xf32, #tpu.memory_space<vmem>>, %arg3: memref<128x512xbf16, #tpu.memory_space<vmem>>) attributes {dimension_semantics = [#tpu.dimension_semantics<parallel>], iteration_bounds = array<i64: 1>, scalar_prefetch = 0 : i64, scratch_operands = 0 : i64, tpu.core_type = #tpu.core_type<tc>, window_params = [{transform_indices = @transform_0, window_bounds = array<i64: 1>}, {transform_indices = @transform_1, window_bounds = array<i64: 128, 512>}, {transform_indices = @transform_2, window_bounds = array<i64: 128, 512>}]} {
    %c0 = arith.constant 0 : index
    %c0_0 = arith.constant 0 : index
    %0 = vector.load %arg2[%c0, %c0_0] : memref<128x512xf32, #tpu.memory_space<vmem>>, vector<128x512xf32>
    %1 = arith.mulf %0, %0 : vector<128x512xf32>
    %cst = arith.constant dense<0.000000e+00> : vector<128xf32>
    %2 = vector.multi_reduction <add>, %1, %cst [1] : vector<128x512xf32> to vector<128xf32>
    %3 = vector.shape_cast %2 : vector<128xf32> to vector<128x1xf32>
    %cst_1 = arith.constant 1.000000e-24 : f32
    %4 = vector.broadcast %cst_1 : f32 to vector<128x1xf32>
    %5 = arith.maximumf %3, %4 : vector<128x1xf32>
    %6 = math.rsqrt %5 : vector<128x1xf32>
    %c0_2 = arith.constant 0 : index
    %7 = memref.load %arg1[%c0_2] : memref<1xf32, #tpu.memory_space<smem>>
    %8 = vector.broadcast %7 : f32 to vector<128x1xf32>
    %9 = arith.mulf %6, %8 : vector<128x1xf32>
    %10 = vector.broadcast %9 : vector<128x1xf32> to vector<128x512xf32>
    %11 = arith.mulf %0, %10 : vector<128x512xf32>
    %12 = arith.truncf %11 : vector<128x512xf32> to vector<128x512xbf16>
    %c0_3 = arith.constant 0 : index
    %c0_4 = arith.constant 0 : index
    %13 = vector.load %arg3[%c0_3, %c0_4] : memref<128x512xbf16, #tpu.memory_space<vmem>>, vector<128x512xbf16>
    tpu.vector_store %arg3[%c0_3, %c0_4], %12 {strides = array<i32>} : memref<128x512xbf16, #tpu.memory_space<vmem>>, vector<128x512xbf16>,
    return
  }
  func.func @transform_0(%arg0: i32) -> i32 {
    %c0_i32 = arith.constant 0 : i32
    %c0_i32_0 = arith.constant 0 : i32
    return %c0_i32 : i32
  }
  func.func @transform_1(%arg0: i32) -> (i32, i32) {
    %c0_i32 = arith.constant 0 : i32
    %c0_i32_0 = arith.constant 0 : i32
    return %arg0, %c0_i32 : i32, i32
  }
  func.func @transform_2(%arg0: i32) -> (i32, i32) {
    %c0_i32 = arith.constant 0 : i32
    %c0_i32_0 = arith.constant 0 : i32
    return %arg0, %c0_i32 : i32, i32
  }
}

</mosaic_0001>

<bundles_post_ra>
// kernel: tpu_custom_call.1
= control target key start
LH: loop header
LB: loop body
LE: loop exit
PB: predicated region body
PF: predicated region fallthrough
CT: control target
= control target key end

     0   :  { %8 = vsyncpa [#allocation4], 0  ;;  %s1126_s0 = inlined_call_operand.<no memory space> [shape: f32[1], index: 0, kind: input, shape index: {}]   ;;  %s1127_s1 = inlined_call_operand.hbm [shape: f32[128,512], index: 1, kind: input, shape index: {}]   ;;  %s1128_s2 = inlined_call_operand.hbm [shape: bf16[128,512], index: 2, kind: output, shape index: {}]  }
   0x1   :  { %9 = vsyncpa [#allocation5], 0  ;;  %s740_s9 = smov [#allocation3]   ;;  %s692_s13 = scalar_lea.hbm %s1127_s1, 8192 }
   0x2   :  { %s17_s10 = sshll.u32 %s740_s9, 4  ;;  %p693_p0 = scmp.ne.s32.totalorder %s1127_s1, %s692_s13  ;;  %s18_s10 = int_to_ptr.vmem [resolvable:$true] %s17_s10 }
   0x3   :  { %p696_p1 = scmp.lt.u32.totalorder %s692_s13, %s1127_s1 }
   0x5   :  { %p698_p2 = pnand %p696_p1, %p693_p0 }
   0x7   :  { %701 = shalt.err (!%p698_p2)
}
   0x8   :  { %s702_s18 = scalar_lea.vmem %s18_s10, 8192  ;;  %p707_p4 = scmp.lt.s32.totalorder %s18_s10, %s18_s10 }
   0x9   :  { %p703_p3 = scmp.ne.s32.totalorder %s18_s10, %s702_s18  ;;  %p708_p5 = scmp.lt.s32.totalorder %s702_s18, %s702_s18 }
   0xb   :  { %p709_p6 = por %p708_p5, %p707_p4 }
   0xd   :  { %p710_p7 = pnand %p709_p6, %p703_p3 }
   0xf   :  { %713 = shalt.err (!%p710_p7)
}
  0x10   :  { %s741_s19 = smov 512   ;;  %s742_s20 = smov 32  }
  0x11   :  { %23 = dma.hbm_to_vmem [thread:$0]  %s1127_s1, 8192, %s18_s10, [#allocation4], %s741_s19, %s741_s19, %s742_s20  }
  0x12   :  { %736 = dma.done.wait [#allocation4], 8192  }
  0x13   :  { %737 = vsyncadd [#allocation4], 4294959104  ;;  %v773_v0 = vld [vmem:[#allocation3 + $0x40] sm:$0xff]  ;;  %v775_v1 = vld [vmem:[#allocation3 + $0x48] sm:$0xff] }
  0x14   :  { %v777_v2 = vld [vmem:[#allocation3 + $0x50] sm:$0xff]  ;;  %v779_v3 = vld [vmem:[#allocation3 + $0x58] sm:$0xff]  ;;  %v99_v4 = vmul.f32 %v773_v0, %v773_v0  ;;  %v100_v5 = vmul.f32 %v775_v1, %v775_v1  ;;  %v787_v7 = vld [vmem:[#allocation3] sm:$0xff] }
  0x15   :  { %v101_v6 = vmul.f32 %v777_v2, %v777_v2  ;;  %v789_v8 = vld [vmem:[#allocation3 + $0x8] sm:$0xff]  ;;  %v102_v9 = vmul.f32 %v779_v3, %v779_v3  ;;  %v793_v10 = vld [vmem:[#allocation3 + $0x10] sm:$0xff]  ;;  %v795_v11 = vld [vmem:[#allocation3 + $0x18] sm:$0xff]  ;;  %v91_v12 = vmul.f32 %v787_v7, %v787_v7 }
  0x16   :  { %v92_v13 = vmul.f32 %v789_v8, %v789_v8  ;;  %v801_v14 = vld [vmem:[#allocation3 + $0x60] sm:$0xff]  ;;  %v165_v15 = vadd.f32 %v100_v5, %v99_v4  ;;  %v93_v16 = vmul.f32 %v793_v10, %v793_v10  ;;  %v94_v17 = vmul.f32 %v795_v11, %v795_v11  ;;  %v807_v18 = vld [vmem:[#allocation3 + $0x68] sm:$0xff]  ;;  %v809_v19 = vld [vmem:[#allocation3 + $0x70] sm:$0xff] }
  0x17   :  { %v811_v20 = vld [vmem:[#allocation3 + $0x78] sm:$0xff]  ;;  %v103_v21 = vmul.f32 %v801_v14, %v801_v14  ;;  %v104_v23 = vmul.f32 %v807_v18, %v807_v18  ;;  %v105_v24 = vmul.f32 %v809_v19, %v809_v19  ;;  %v821_v26 = vld [vmem:[#allocation3 + $0x20] sm:$0xff]  ;;  %v823_v27 = vld [vmem:[#allocation3 + $0x28] sm:$0xff] }
  0x18   :  { %v155_v22 = vadd.f32 %v92_v13, %v91_v12  ;;  %v106_v25 = vmul.f32 %v811_v20, %v811_v20  ;;  %v825_v28 = vld [vmem:[#allocation3 + $0x30] sm:$0xff]  ;;  %v166_v29 = vadd.f32 %v165_v15, %v101_v6  ;;  %v827_v30 = vld [vmem:[#allocation3 + $0x38] sm:$0xff]  ;;  %v95_v31 = vmul.f32 %v821_v26, %v821_v26  ;;  %v835_v34 = vld [vmem:[#allocation3 + $0xa0] sm:$0xff] }
  0x19   :  { %v96_v32 = vmul.f32 %v823_v27, %v823_v27  ;;  %v97_v33 = vmul.f32 %v825_v28, %v825_v28  ;;  %v837_v35 = vld [vmem:[#allocation3 + $0xa8] sm:$0xff]  ;;  %v170_v37 = vadd.f32 %v104_v23, %v103_v21  ;;  %v98_v38 = vmul.f32 %v827_v30, %v827_v30  ;;  %v841_v39 = vld [vmem:[#allocation3 + $0xb0] sm:$0xff]  ;;  %v843_v40 = vld [vmem:[#allocation3 + $0xb8] sm:$0xff] }
  0x1a   :  { %v156_v36 = vadd.f32 %v155_v22, %v93_v16  ;;  %v111_v41 = vmul.f32 %v835_v34, %v835_v34  ;;  %v847_v42 = vld [vmem:[#allocation3 + $0x80] sm:$0xff]  ;;  %v167_v43 = vadd.f32 %v166_v29, %v102_v9  ;;  %v112_v45 = vmul.f32 %v837_v35, %v837_v35  ;;  %v853_v47 = vld [vmem:[#allocation3 + $0x88] sm:$0xff]  ;;  %v855_v48 = vld [vmem:[#allocation3 + $0x90] sm:$0xff] }
  0x1b   :  { %v160_v44 = vadd.f32 %v96_v32, %v95_v31  ;;  %v113_v46 = vmul.f32 %v841_v39, %v841_v39  ;;  %v857_v49 = vld [vmem:[#allocation3 + $0x98] sm:$0xff]  ;;  %v171_v51 = vadd.f32 %v170_v37, %v105_v24  ;;  %v114_v52 = vmul.f32 %v843_v40, %v843_v40  ;;  %v863_v54 = vld [vmem:[#allocation3 + $0xe0] sm:$0xff]  ;;  %v865_v55 = vld [vmem:[#allocation3 + $0xe8] sm:$0xff] }
  0x1c   :  { %v157_v50 = vadd.f32 %v156_v36, %v94_v17  ;;  %v107_v53 = vmul.f32 %v847_v42, %v847_v42  ;;  %v867_v56 = vld [vmem:[#allocation3 + $0xf0] sm:$0xff]  ;;  %168 = vadd.xlane.f32.xlu1 %v167_v43  ;;  %v180_v58 = vadd.f32 %v112_v45, %v111_v41  ;;  %v108_v59 = vmul.f32 %v853_v47, %v853_v47  ;;  %v873_v61 = vld [vmem:[#allocation3 + $0xf8] sm:$0xff]  ;;  %v875_v62 = vld [vmem:[#allocation3 + $0xc0] sm:$0xff] }
  0x1d   :  { %v161_v57 = vadd.f32 %v160_v44, %v97_v33  ;;  %v109_v60 = vmul.f32 %v855_v48, %v855_v48  ;;  %v877_v63 = vld [vmem:[#allocation3 + $0xc8] sm:$0xff]  ;;  %v172_v4 = vadd.f32 %v171_v51, %v106_v25  ;;  %v110_v5 = vmul.f32 %v857_v49, %v857_v49  ;;  %v885_v12 = vld [vmem:[#allocation3 + $0xd0] sm:$0xff]  ;;  %v887_v13 = vld [vmem:[#allocation3 + $0xd8] sm:$0xff] }
  0x1e   :  { %158 = vadd.xlane.f32.xlu0 %v157_v50  ;;  %v119_v6 = vmul.f32 %v863_v54, %v863_v54  ;;  %v120_v9 = vmul.f32 %v865_v55, %v865_v55  ;;  %v181_v16 = vadd.f32 %v180_v58, %v113_v46  ;;  %v175_v17 = vadd.f32 %v108_v59, %v107_v53  ;;  %v891_v22 = vld [vmem:[#allocation3 + $0x120] sm:$0xff]  ;;  %v893_v23 = vld [vmem:[#allocation3 + $0x128] sm:$0xff]  ;;  %v901_v32 = vld [vmem:[#allocation3 + $0x130] sm:$0xff] }
  0x1f   :  { %v162_v15 = vadd.f32 %v161_v57, %v98_v38  ;;  %v121_v21 = vmul.f32 %v867_v56, %v867_v56  ;;  %v122_v24 = vmul.f32 %v873_v61, %v873_v61  ;;  %v115_v29 = vmul.f32 %v875_v62, %v875_v62  ;;  %v903_v33 = vld [vmem:[#allocation3 + $0x138] sm:$0xff]  ;;  %v905_v36 = vld [vmem:[#allocation3 + $0x100] sm:$0xff]  ;;  %v911_v44 = vld [vmem:[#allocation3 + $0x108] sm:$0xff] }
  0x20   :  { %v190_v25 = vadd.f32 %v120_v9, %v119_v6  ;;  %v116_v31 = vmul.f32 %v877_v63, %v877_v63  ;;  %1150 = vst [vmem:[#allocation9_spill] sm:$0xff] %v905_v36  ;;  %173 = vadd.xlane.f32.xlu1 %v172_v4  ;;  %v182_v37 = vadd.f32 %v181_v16, %v114_v52  ;;  %1151 = vst [vmem:[#allocation10_spill] sm:$0xff] %v911_v44  ;;  %v913_v45 = vld [vmem:[#allocation3 + $0x110] sm:$0xff]  ;;  %v919_v53 = vld [vmem:[#allocation3 + $0x118] sm:$0xff] }
  0x21   :  { %v176_v38 = vadd.f32 %v175_v17, %v109_v60  ;;  %v117_v41 = vmul.f32 %v885_v12, %v885_v12  ;;  %v118_v43 = vmul.f32 %v887_v13, %v887_v13  ;;  %1152 = vst [vmem:[#allocation11_spill] sm:$0xff] %v913_v45  ;;  %v127_v51 = vmul.f32 %v891_v22, %v891_v22  ;;  %v921_v57 = vld [vmem:[#allocation3 + $0x160] sm:$0xff]  ;;  %v923_v58 = vld [vmem:[#allocation3 + $0x168] sm:$0xff]  ;;  %v931_v9 = vld [vmem:[#allocation3 + $0x170] sm:$0xff] }
  0x22   :  { %163 = vadd.xlane.f32.xlu0 %v162_v15  ;;  %v191_v46 = vadd.f32 %v190_v25, %v121_v21  ;;  %v185_v50 = vadd.f32 %v116_v31, %v115_v29  ;;  %v128_v52 = vmul.f32 %v893_v23, %v893_v23  ;;  %1153 = vst [vmem:[#allocation12_spill] sm:$0xff] %v919_v53  ;;  %1154 = vst [vmem:[#allocation13_spill] sm:$0xff] %v921_v57  ;;  %v935_v25 = vld [vmem:[#allocation3 + $0x140] sm:$0xff] }
  0x23   :  { %1155 = vst [vmem:[#allocation14_spill] sm:$0xff] %v923_v58  ;;  %v177_v59 = vadd.f32 %v176_v38, %v110_v5  ;;  %v129_v60 = vmul.f32 %v901_v32, %v901_v32  ;;  %v130_v4 = vmul.f32 %v903_v33, %v903_v33  ;;  %v123_v6 = vmul.f32 %v905_v36, %v905_v36  ;;  %v937_v5 = vld [vmem:[#allocation3 + $0x148] sm:$0xff]  ;;  %v943_v38 = vld [vmem:[#allocation3 + $0x178] sm:$0xff] }
  0x24   :  { %v192_v15 = vadd.f32 %v191_v46, %v122_v24  ;;  %v186_v16 = vadd.f32 %v185_v50, %v117_v41  ;;  %v200_v17 = vadd.f32 %v128_v52, %v127_v51  ;;  %v124_v21 = vmul.f32 %v911_v44, %v911_v44  ;;  %1156 = vst [vmem:[#allocation15_spill] sm:$0xff] %v935_v25  ;;  %v949_v46 = vld [vmem:[#allocation3 + $0x150] sm:$0xff]  ;;  %v957_v36 = vld [vmem:[#allocation3 + $0x158] sm:$0xff] }
  0x25   :  { %1157 = vst [vmem:[#allocation16_spill] sm:$0xff] %v937_v5  ;;  %183 = vadd.xlane.f32.xlu1 %v182_v37  ;;  %v125_v29 = vmul.f32 %v913_v45, %v913_v45  ;;  %v126_v31 = vmul.f32 %v919_v53, %v919_v53  ;;  %1158 = vst [vmem:[#allocation17_spill] sm:$0xff] %v943_v38  ;;  %v135_v24 = vmul.f32 %v921_v57, %v921_v57  ;;  %v953_v45 = vld [vmem:[#allocation3 + $0x1a0] sm:$0xff]  ;;  %v955_v53 = vld [vmem:[#allocation3 + $0x1a8] sm:$0xff] }
  0x26   :  { %v136_v41 = vmul.f32 %v923_v58, %v923_v58  ;;  %1159 = vst [vmem:[#allocation18_spill] sm:$0xff] %v949_v46  ;;  %178 = vadd.xlane.f32.xlu0 %v177_v59  ;;  %v187_v50 = vadd.f32 %v186_v16, %v118_v43  ;;  %v201_v51 = vadd.f32 %v200_v17, %v129_v60  ;;  %1160 = vst [vmem:[#allocation19_spill] sm:$0xff] %v953_v45  ;;  %v963_v59 = vld [vmem:[#allocation3 + $0x1b0] sm:$0xff]  ;;  %v965_v43 = vld [vmem:[#allocation3 + $0x180] sm:$0xff] }
  0x27   :  { %v195_v37 = vadd.f32 %v124_v21, %v123_v6  ;;  %v137_v52 = vmul.f32 %v931_v9, %v931_v9  ;;  %1161 = vst [vmem:[#allocation20_spill] sm:$0xff] %v955_v53  ;;  %1162 = vst [vmem:[#allocation21_spill] sm:$0xff] %v957_v36  ;;  %v131_v57 = vmul.f32 %v935_v25, %v935_v25  ;;  %v971_v21 = vld [vmem:[#allocation3 + $0x1b8] sm:$0xff] }
  0x28   :  { %v210_v44 = vadd.f32 %v136_v41, %v135_v24  ;;  %v132_v58 = vmul.f32 %v937_v5, %v937_v5  ;;  %1163 = vst [vmem:[#allocation22_spill] sm:$0xff] %v963_v59  ;;  %1164 = vst [vmem:[#allocation23_spill] sm:$0xff] %v965_v43  ;;  %v202_v60 = vadd.f32 %v201_v51, %v130_v4  ;;  %v973_v24 = vld [vmem:[#allocation3 + $0x188] sm:$0xff]  ;;  %v981_v51 = vld [vmem:[#allocation3 + $0x1e0] sm:$0xff] }
  0x29   :  { %v196_v6 = vadd.f32 %v195_v37, %v125_v29  ;;  %v138_v16 = vmul.f32 %v943_v38, %v943_v38  ;;  %v133_v17 = vmul.f32 %v949_v46, %v949_v46  ;;  %1165 = vst [vmem:[#allocation24_spill] sm:$0xff] %v971_v21  ;;  %1166 = vst [vmem:[#allocation25_spill] sm:$0xff] %v973_v24  ;;  %193 = vadd.xlane.f32.xlu1 %v192_v15  ;;  %v979_v29 = vld [vmem:[#allocation3 + $0x190] sm:$0xff]  ;;  %v983_v37 = vld [vmem:[#allocation3 + $0x1e8] sm:$0xff] }
  0x2a   :  { %v211_v41 = vadd.f32 %v210_v44, %v137_v52  ;;  %v205_v25 = vadd.f32 %v132_v58, %v131_v57  ;;  %v143_v5 = vmul.f32 %v953_v45, %v953_v45  ;;  %v144_v4 = vmul.f32 %v955_v53, %v955_v53  ;;  %1167 = vst [vmem:[#allocation26_spill] sm:$0xff] %v979_v29  ;;  %v989_v57 = vld [vmem:[#allocation3 + $0x198] sm:$0xff]  ;;  %v993_v15 = vld [vmem:[#allocation3 + $0x1f0] sm:$0xff] }
  0x2b   :  { %1168 = vst [vmem:[#allocation27_spill] sm:$0xff] %v981_v51  ;;  %1169 = vst [vmem:[#allocation28_spill] sm:$0xff] %v983_v37  ;;  %188 = vadd.xlane.f32.xlu0 %v187_v50  ;;  %v197_v46 = vadd.f32 %v196_v6, %v126_v31  ;;  %v134_v38 = vmul.f32 %v957_v36, %v957_v36  ;;  %v145_v44 = vmul.f32 %v963_v59, %v963_v59  ;;  %v999_v50 = vld [vmem:[#allocation3 + $0x1c0] sm:$0xff]  ;;  %v1001_v6 = vld [vmem:[#allocation3 + $0x1c8] sm:$0xff] }
  0x2c   :  { %v139_v58 = vmul.f32 %v965_v43, %v965_v43  ;;  %v206_v52 = vadd.f32 %v205_v25, %v133_v17  ;;  %v146_v53 = vmul.f32 %v971_v21, %v971_v21  ;;  %v220_v45 = vadd.f32 %v144_v4, %v143_v5  ;;  %v1009_v17 = vld [vmem:[#allocation3 + $0x1d0] sm:$0xff] }
  0x2d   :  { %v140_v31 = vmul.f32 %v973_v24, %v973_v24  ;;  %v212_v59 = vadd.f32 %v211_v41, %v138_v16  ;;  %v141_v36 = vmul.f32 %v979_v29, %v979_v29  ;;  %v151_v43 = vmul.f32 %v981_v51, %v981_v51  ;;  %1170 = vst [vmem:[#allocation29_spill] sm:$0xff] %v1009_v17  ;;  %v1015_v29 = vld [vmem:[#allocation3 + $0x1f8] sm:$0xff] }
  0x2e   :  { %v152_v25 = vmul.f32 %v983_v37, %v983_v37  ;;  %203 = vadd.xlane.f32.xlu1 %v202_v60  ;;  %v221_v5 = vadd.f32 %v220_v45, %v145_v44  ;;  %v142_v4 = vmul.f32 %v989_v57, %v989_v57  ;;  %v153_v16 = vmul.f32 %v993_v15, %v993_v15  ;;  %v1021_v45 = vld [vmem:[#allocation3 + $0x1d8] sm:$0xff] }
  0x2f   :  { %v215_v24 = vadd.f32 %v140_v31, %v139_v58  ;;  %198 = vadd.xlane.f32.xlu0 %v197_v46  ;;  %v207_v41 = vadd.f32 %v206_v52, %v134_v38  ;;  %v147_v51 = vmul.f32 %v999_v50, %v999_v50  ;;  %v148_v37 = vmul.f32 %v1001_v6, %v1001_v6 }
  0x30   :  { %v230_v21 = vadd.f32 %v152_v25, %v151_v43  ;;  %v149_v44 = vmul.f32 %v1009_v17, %v1009_v17  ;;  %v222_v31 = vadd.f32 %v221_v5, %v146_v53  ;;  %v154_v38 = vmul.f32 %v1015_v29, %v1015_v29 }
  0x31   :  { %v216_v60 = vadd.f32 %v215_v24, %v141_v36  ;;  %v225_v58 = vadd.f32 %v148_v37, %v147_v51  ;;  %v150_v52 = vmul.f32 %v1021_v45, %v1021_v45 }
  0x32   :  { %213 = vadd.xlane.f32.xlu1 %v212_v59  ;;  %v231_v46 = vadd.f32 %v230_v21, %v153_v16 }
  0x33   :  { %208 = vadd.xlane.f32.xlu0 %v207_v41  ;;  %v217_v43 = vadd.f32 %v216_v60, %v142_v4  ;;  %v226_v25 = vadd.f32 %v225_v58, %v149_v44  ;;  %v1032_v58 = vstv %s1126_s0  ;;  %s743_s0 = smov [#allocation6]  }
  0x34   :  { %v232_v36 = vadd.f32 %v231_v46, %v154_v38  ;;  %s578_s24 = sshll.u32 %s743_s0, 4  ;;  %s579_s24 = int_to_ptr.vmem [resolvable:$true] %s578_s24 }
  0x35   :  { %v227_v24 = vadd.f32 %v226_v25, %v150_v52  ;;  %s714_s25 = scalar_lea.vmem %s579_s24, 4096  ;;  %p719_p9 = scmp.lt.s32.totalorder %s579_s24, %s579_s24 }
  0x36   :  { %223 = vadd.xlane.f32.xlu1 %v222_v31  ;;  %p715_p8 = scmp.ne.s32.totalorder %s579_s24, %s714_s25  ;;  %p720_p10 = scmp.lt.s32.totalorder %s714_s25, %s714_s25 }
  0x37   :  { %218 = vadd.xlane.f32.xlu0 %v217_v43 }
  0x38   :  { %p721_p11 = por %p720_p10, %p719_p9 }
  0x3a   :  { %233 = vadd.xlane.f32.xlu1 %v232_v36  ;;  %p722_p12 = pnand %p721_p11, %p715_p8 }
  0x3b   :  { %228 = vadd.xlane.f32.xlu0 %v227_v24 }
  0xa9   :  { %v169_v17 = vpop.xlane.xlu1 %168 }
  0xaa   :  { %v237_v51 = vmax.f32 %v169_v17, 1e-24 }
  0xab   :  { %v159_v59 = vpop.xlane.xlu0 %158 }
  0xac   :  { %v235_v53 = vmax.f32 %v159_v59, 1e-24  ;;  %660 = vrsqrt.f32 %v237_v51 }
  0xad   :  { %v174_v37 = vpop.xlane.xlu1 %173 }
  0xae   :  { %662 = vrsqrt.f32 %v235_v53  ;;  %v238_v21 = vmax.f32 %v174_v37, 1e-24 }
  0xaf   :  { %v164_v5 = vpop.xlane.xlu0 %163 }
  0xb0   :  { %v236_v4 = vmax.f32 %v164_v5, 1e-24  ;;  %664 = vrsqrt.f32 %v238_v21 }
  0xb2   :  { %666 = vrsqrt.f32 %v236_v4  ;;  %v184_v16 = vpop.xlane.xlu1 %183 }
  0xb3   :  { %v240_v41 = vmax.f32 %v184_v16, 1e-24  ;;  %v179_v60 = vpop.xlane.xlu0 %178 }
  0xb4   :  { %v239_v44 = vmax.f32 %v179_v60, 1e-24 }
  0xb5   :  { %668 = vrsqrt.f32 %v240_v41 }
  0xb6   :  { %670 = vrsqrt.f32 %v239_v44  ;;  %v194_v17 = vpop.xlane.xlu1 %193  ;;  %v661_v31 = vpop.eup %660 }
  0xb7   :  { %v242_v38 = vmax.f32 %v194_v17, 1e-24  ;;  %v271_v52 = vmul.f32 %v661_v31, %v1032_v58 }
  0xb8   :  { %v189_v46 = vpop.xlane.xlu0 %188  ;;  %v663_v43 = vpop.eup %662 }
  0xb9   :  { %v241_v25 = vmax.f32 %v189_v46, 1e-24  ;;  %v269_v36 = vmul.f32 %v663_v43, %v1032_v58  ;;  %672 = vrsqrt.f32 %v242_v38  ;;  %v293_v24 = vmul.f32 %v271_v52, %v773_v0 }
  0xba   :  { %v294_v51 = vmul.f32 %v271_v52, %v775_v1  ;;  %v295_v59 = vmul.f32 %v271_v52, %v777_v2  ;;  %v296_v53 = vmul.f32 %v271_v52, %v779_v3  ;;  %v665_v21 = vpop.eup %664 }
  0xbb   :  { %v204_v37 = vpop.xlane.xlu1 %203  ;;  %v285_v5 = vmul.f32 %v269_v36, %v787_v7  ;;  %v286_v4 = vmul.f32 %v269_v36, %v789_v8  ;;  %v287_v16 = vmul.f32 %v269_v36, %v793_v10  ;;  %v288_v41 = vmul.f32 %v269_v36, %v795_v11 }
  0xbc   :  { %v199_v60 = vpop.xlane.xlu0 %198  ;;  %v667_v44 = vpop.eup %666  ;;  %v626_v17 = vpack.c.bf16 %v294_v51, %v293_v24  ;;  %v627_v0 = vpack.c.bf16 %v296_v53, %v295_v59  ;;  %v272_v1 = vmul.f32 %v665_v21, %v1032_v58  ;;  %674 = vrsqrt.f32 %v241_v25 }
  0xbd   :  { %v622_v2 = vpack.c.bf16 %v286_v4, %v285_v5  ;;  %v623_v31 = vpack.c.bf16 %v288_v41, %v287_v16  ;;  %v270_v3 = vmul.f32 %v667_v44, %v1032_v58  ;;  %v244_v38 = vmax.f32 %v204_v37, 1e-24 }
  0xbe   :  { %545 = vst [vmem:[#allocation6 + $0x20] sm:$0xff] %v626_v17  ;;  %546 = vst [vmem:[#allocation6 + $0x28] sm:$0xff] %v627_v0  ;;  %v297_v7 = vmul.f32 %v272_v1, %v801_v14  ;;  %v298_v8 = vmul.f32 %v272_v1, %v807_v18  ;;  %v299_v10 = vmul.f32 %v272_v1, %v809_v19  ;;  %v243_v21 = vmax.f32 %v199_v60, 1e-24 }
  0xbf   :  { %v300_v11 = vmul.f32 %v272_v1, %v811_v20  ;;  %v214_v46 = vpop.xlane.xlu1 %213  ;;  %v669_v43 = vpop.eup %668  ;;  %541 = vst [vmem:[#allocation6] sm:$0xff] %v622_v2  ;;  %542 = vst [vmem:[#allocation6 + $0x8] sm:$0xff] %v623_v31  ;;  %v289_v52 = vmul.f32 %v270_v3, %v821_v26  ;;  %v290_v25 = vmul.f32 %v270_v3, %v823_v27  ;;  %676 = vrsqrt.f32 %v244_v38 }
  0xc0   :  { %v291_v36 = vmul.f32 %v270_v3, %v825_v28  ;;  %v292_v24 = vmul.f32 %v270_v3, %v827_v30  ;;  %v209_v51 = vpop.xlane.xlu0 %208  ;;  %v671_v14 = vpop.eup %670  ;;  %v628_v59 = vpack.c.bf16 %v298_v8, %v297_v7  ;;  %v274_v19 = vmul.f32 %v669_v43, %v1032_v58 }
  0xc1   :  { %v629_v18 = vpack.c.bf16 %v300_v11, %v299_v10  ;;  %v624_v20 = vpack.c.bf16 %v290_v25, %v289_v52  ;;  %v273_v37 = vmul.f32 %v671_v14, %v1032_v58  ;;  %678 = vrsqrt.f32 %v243_v21  ;;  %v1172_v21 = vld [vmem:[#allocation10_spill] sm:$0xff] }
  0xc2   :  { %v625_v53 = vpack.c.bf16 %v292_v24, %v291_v36  ;;  %547 = vst [vmem:[#allocation6 + $0x30] sm:$0xff] %v628_v59  ;;  %v305_v26 = vmul.f32 %v274_v19, %v835_v34  ;;  %v306_v27 = vmul.f32 %v274_v19, %v837_v35  ;;  %v307_v28 = vmul.f32 %v274_v19, %v841_v39 }
  0xc3   :  { %548 = vst [vmem:[#allocation6 + $0x38] sm:$0xff] %v629_v18  ;;  %v308_v30 = vmul.f32 %v274_v19, %v843_v40  ;;  %v224_v5 = vpop.xlane.xlu1 %223  ;;  %v673_v4 = vpop.eup %672  ;;  %543 = vst [vmem:[#allocation6 + $0x10] sm:$0xff] %v624_v20  ;;  %v301_v16 = vmul.f32 %v273_v37, %v847_v42  ;;  %v302_v41 = vmul.f32 %v273_v37, %v853_v47  ;;  %v246_v1 = vmax.f32 %v214_v46, 1e-24 }
  0xc4   :  { %544 = vst [vmem:[#allocation6 + $0x18] sm:$0xff] %v625_v53  ;;  %v303_v60 = vmul.f32 %v273_v37, %v855_v48  ;;  %v304_v44 = vmul.f32 %v273_v37, %v857_v49  ;;  %v219_v17 = vpop.xlane.xlu0 %218  ;;  %v632_v34 = vpack.c.bf16 %v306_v27, %v305_v26  ;;  %v276_v35 = vmul.f32 %v673_v4, %v1032_v58  ;;  %v1171_v53 = vld [vmem:[#allocation9_spill] sm:$0xff] }
  0xc5   :  { %v633_v0 = vpack.c.bf16 %v308_v30, %v307_v28  ;;  %v630_v39 = vpack.c.bf16 %v302_v41, %v301_v16  ;;  %v245_v2 = vmax.f32 %v209_v51, 1e-24  ;;  %680 = vrsqrt.f32 %v246_v1  ;;  %v1175_v41 = vld [vmem:[#allocation13_spill] sm:$0xff] }
  0xc6   :  { %v631_v40 = vpack.c.bf16 %v304_v44, %v303_v60  ;;  %v675_v31 = vpop.eup %674  ;;  %551 = vst [vmem:[#allocation6 + $0x50] sm:$0xff] %v632_v34  ;;  %v313_v42 = vmul.f32 %v276_v35, %v863_v54  ;;  %v314_v47 = vmul.f32 %v276_v35, %v865_v55  ;;  %v315_v48 = vmul.f32 %v276_v35, %v867_v56  ;;  %v1176_v44 = vld [vmem:[#allocation14_spill] sm:$0xff] }
  0xc7   :  { %552 = vst [vmem:[#allocation6 + $0x58] sm:$0xff] %v633_v0  ;;  %v316_v49 = vmul.f32 %v276_v35, %v873_v61  ;;  %v234_v3 = vpop.xlane.xlu1 %233  ;;  %549 = vst [vmem:[#allocation6 + $0x40] sm:$0xff] %v630_v39  ;;  %v275_v38 = vmul.f32 %v675_v31, %v1032_v58  ;;  %v248_v7 = vmax.f32 %v224_v5, 1e-24  ;;  %v247_v8 = vmax.f32 %v219_v17, 1e-24 }
  0xc8   :  { %550 = vst [vmem:[#allocation6 + $0x48] sm:$0xff] %v631_v40  ;;  %v229_v10 = vpop.xlane.xlu0 %228  ;;  %v636_v11 = vpack.c.bf16 %v314_v47, %v313_v42  ;;  %682 = vrsqrt.f32 %v245_v2  ;;  %v250_v43 = vmax.f32 %v234_v3, 1e-24  ;;  %v1177_v0 = vld [vmem:[#allocation17_spill] sm:$0xff]  ;;  %v1178_v40 = vld [vmem:[#allocation15_spill] sm:$0xff]  ;;  %v1179_v2 = vld [vmem:[#allocation16_spill] sm:$0xff] }
  0xc9   :  { %v637_v46 = vpack.c.bf16 %v316_v49, %v315_v48  ;;  %v309_v54 = vmul.f32 %v275_v38, %v875_v62  ;;  %v310_v55 = vmul.f32 %v275_v38, %v877_v63  ;;  %v311_v56 = vmul.f32 %v275_v38, %v885_v12  ;;  %v677_v52 = vpop.eup %676  ;;  %v1180_v42 = vld [vmem:[#allocation18_spill] sm:$0xff]  ;;  %v1181_v48 = vld [vmem:[#allocation21_spill] sm:$0xff] }
  0xca   :  { %v312_v61 = vmul.f32 %v275_v38, %v887_v13  ;;  %555 = vst [vmem:[#allocation6 + $0x70] sm:$0xff] %v636_v11  ;;  %684 = vrsqrt.f32 %v248_v7  ;;  %v249_v25 = vmax.f32 %v229_v10, 1e-24  ;;  %v278_v51 = vmul.f32 %v677_v52, %v1032_v58 }
  0xcb   :  { %556 = vst [vmem:[#allocation6 + $0x78] sm:$0xff] %v637_v46  ;;  %v634_v36 = vpack.c.bf16 %v310_v55, %v309_v54  ;;  %686 = vrsqrt.f32 %v247_v8  ;;  %v679_v14 = vpop.eup %678  ;;  %v1183_v55 = vld [vmem:[#allocation20_spill] sm:$0xff] }
  0xcc   :  { %v635_v24 = vpack.c.bf16 %v312_v61, %v311_v56  ;;  %688 = vrsqrt.f32 %v250_v43  ;;  %v321_v62 = vmul.f32 %v278_v51, %v891_v22  ;;  %v322_v63 = vmul.f32 %v278_v51, %v893_v23  ;;  %v1173_v22 = vld [vmem:[#allocation11_spill] sm:$0xff]  ;;  %v1174_v23 = vld [vmem:[#allocation12_spill] sm:$0xff]  ;;  %v1184_v61 = vld [vmem:[#allocation22_spill] sm:$0xff] }
  0xcd   :  { %553 = vst [vmem:[#allocation6 + $0x60] sm:$0xff] %v634_v36  ;;  %v323_v12 = vmul.f32 %v278_v51, %v901_v32  ;;  %v324_v13 = vmul.f32 %v278_v51, %v903_v33  ;;  %v277_v19 = vmul.f32 %v679_v14, %v1032_v58  ;;  %690 = vrsqrt.f32 %v249_v25  ;;  %v1182_v43 = vld [vmem:[#allocation19_spill] sm:$0xff]  ;;  %v1185_v25 = vld [vmem:[#allocation24_spill] sm:$0xff] }
  0xce   :  { %554 = vst [vmem:[#allocation6 + $0x68] sm:$0xff] %v635_v24  ;;  %v640_v59 = vpack.c.bf16 %v322_v63, %v321_v62  ;;  %v1186_v51 = vld [vmem:[#allocation23_spill] sm:$0xff]  ;;  %v1187_v63 = vld [vmem:[#allocation25_spill] sm:$0xff] }
  0xcf   :  { %v641_v18 = vpack.c.bf16 %v324_v13, %v323_v12  ;;  %v681_v20 = vpop.eup %680  ;;  %v317_v37 = vmul.f32 %v277_v19, %v1171_v53  ;;  %v318_v26 = vmul.f32 %v277_v19, %v1172_v21  ;;  %v319_v27 = vmul.f32 %v277_v19, %v1173_v22  ;;  %v1188_v13 = vld [vmem:[#allocation26_spill] sm:$0xff] }
  0xd0   :  { %559 = vst [vmem:[#allocation6 + $0x90] sm:$0xff] %v640_v59  ;;  %v320_v28 = vmul.f32 %v277_v19, %v1174_v23  ;;  %v280_v33 = vmul.f32 %v681_v20, %v1032_v58  ;;  %v1189_v20 = vld [vmem:[#allocation27_spill] sm:$0xff] }
  0xd1   :  { %560 = vst [vmem:[#allocation6 + $0x98] sm:$0xff] %v641_v18  ;;  %v638_v30 = vpack.c.bf16 %v318_v26, %v317_v37  ;;  %v1190_v37 = vld [vmem:[#allocation28_spill] sm:$0xff] }
  0xd2   :  { %v683_v32 = vpop.eup %682  ;;  %v639_v5 = vpack.c.bf16 %v320_v28, %v319_v27  ;;  %v329_v60 = vmul.f32 %v280_v33, %v1175_v41  ;;  %v330_v17 = vmul.f32 %v280_v33, %v1176_v44  ;;  %v331_v34 = vmul.f32 %v280_v33, %v931_v9 }
  0xd3   :  { %v279_v4 = vmul.f32 %v683_v32, %v1032_v58  ;;  %v332_v35 = vmul.f32 %v280_v33, %v1177_v0  ;;  %557 = vst [vmem:[#allocation6 + $0x80] sm:$0xff] %v638_v30 }
  0xd4   :  { %v685_v16 = vpop.eup %684  ;;  %558 = vst [vmem:[#allocation6 + $0x88] sm:$0xff] %v639_v5  ;;  %v644_v38 = vpack.c.bf16 %v330_v17, %v329_v60  ;;  %v1191_v5 = vld [vmem:[#allocation29_spill] sm:$0xff] }
  0xd5   :  { %v687_v39 = vpop.eup %686  ;;  %v325_v1 = vmul.f32 %v279_v4, %v1178_v40  ;;  %v326_v31 = vmul.f32 %v279_v4, %v1179_v2  ;;  %v327_v47 = vmul.f32 %v279_v4, %v1180_v42  ;;  %v328_v49 = vmul.f32 %v279_v4, %v1181_v48 }
  0xd6   :  { %v689_v3 = vpop.eup %688  ;;  %v645_v7 = vpack.c.bf16 %v332_v35, %v331_v34  ;;  %v282_v8 = vmul.f32 %v685_v16, %v1032_v58  ;;  %v281_v9 = vmul.f32 %v687_v39, %v1032_v58  ;;  %563 = vst [vmem:[#allocation6 + $0xb0] sm:$0xff] %v644_v38 }
  0xd7   :  { %v642_v10 = vpack.c.bf16 %v326_v31, %v325_v1  ;;  %v643_v11 = vpack.c.bf16 %v328_v49, %v327_v47  ;;  %v284_v46 = vmul.f32 %v689_v3, %v1032_v58  ;;  %v691_v24 = vpop.eup %690 }
  0xd8   :  { %564 = vst [vmem:[#allocation6 + $0xb8] sm:$0xff] %v645_v7  ;;  %v337_v54 = vmul.f32 %v282_v8, %v1182_v43  ;;  %v338_v56 = vmul.f32 %v282_v8, %v1183_v55  ;;  %v339_v52 = vmul.f32 %v282_v8, %v1184_v61  ;;  %v340_v36 = vmul.f32 %v282_v8, %v1185_v25 }
  0xd9   :  { %561 = vst [vmem:[#allocation6 + $0xa0] sm:$0xff] %v642_v10  ;;  %562 = vst [vmem:[#allocation6 + $0xa8] sm:$0xff] %v643_v11  ;;  %v333_v62 = vmul.f32 %v281_v9, %v1186_v51  ;;  %v334_v12 = vmul.f32 %v281_v9, %v1187_v63  ;;  %v335_v14 = vmul.f32 %v281_v9, %v1188_v13 }
  0xda   :  { %v336_v59 = vmul.f32 %v281_v9, %v989_v57  ;;  %v648_v18 = vpack.c.bf16 %v338_v56, %v337_v54  ;;  %v649_v19 = vpack.c.bf16 %v340_v36, %v339_v52  ;;  %v345_v53 = vmul.f32 %v284_v46, %v1189_v20 }
  0xdb   :  { %v346_v21 = vmul.f32 %v284_v46, %v1190_v37  ;;  %v646_v26 = vpack.c.bf16 %v334_v12, %v333_v62  ;;  %v347_v27 = vmul.f32 %v284_v46, %v993_v15  ;;  %v348_v23 = vmul.f32 %v284_v46, %v1015_v29 }
  0xdc   :  { %v647_v22 = vpack.c.bf16 %v336_v59, %v335_v14  ;;  %567 = vst [vmem:[#allocation6 + $0xd0] sm:$0xff] %v648_v18  ;;  %568 = vst [vmem:[#allocation6 + $0xd8] sm:$0xff] %v649_v19  ;;  %v283_v32 = vmul.f32 %v691_v24, %v1032_v58 }
  0xdd   :  { %v652_v28 = vpack.c.bf16 %v346_v21, %v345_v53  ;;  %565 = vst [vmem:[#allocation6 + $0xc0] sm:$0xff] %v646_v26  ;;  %v653_v57 = vpack.c.bf16 %v348_v23, %v347_v27 }
  0xde   :  { %566 = vst [vmem:[#allocation6 + $0xc8] sm:$0xff] %v647_v22  ;;  %v341_v33 = vmul.f32 %v283_v32, %v999_v50  ;;  %v342_v30 = vmul.f32 %v283_v32, %v1001_v6  ;;  %v343_v4 = vmul.f32 %v283_v32, %v1191_v5  ;;  %v344_v15 = vmul.f32 %v283_v32, %v1021_v45 }
  0xdf   :  { %571 = vst [vmem:[#allocation6 + $0xf0] sm:$0xff] %v652_v28  ;;  %572 = vst [vmem:[#allocation6 + $0xf8] sm:$0xff] %v653_v57 }
  0xe0   :  { %v650_v29 = vpack.c.bf16 %v342_v30, %v341_v33  ;;  %v651_v16 = vpack.c.bf16 %v344_v15, %v343_v4 }
  0xe2   :  { %569 = vst [vmem:[#allocation6 + $0xe0] sm:$0xff] %v650_v29  ;;  %570 = vst [vmem:[#allocation6 + $0xe8] sm:$0xff] %v651_v16 }
  0xe3   :  { %725 = shalt.err (!%p722_p12)
}
  0xe4   :  { %s726_s28 = scalar_lea.hbm %s1128_s2, 4096 }
  0xe5   :  { %p727_p13 = scmp.ne.s32.totalorder %s1128_s2, %s726_s28  ;;  %p730_p0 = scmp.lt.u32.totalorder %s726_s28, %s1128_s2 }
  0xe7   :  { %p732_p1 = pnand %p730_p0, %p727_p13 }
  0xe9   :  { %735 = shalt.err (!%p732_p1)
}
  0xea   :  { %s744_s5 = smov 256   ;;  %s745_s6 = smov 16  }
  0xeb   :  { %584 = dma.vmem_to_hbm [thread:$0]  %s579_s24, 4096, %s1128_s2, [#allocation5], %s744_s5, %s744_s5, %s745_s6  }
  0xec   :  { %738 = dma.done.wait [#allocation5], 4096  }
  0xed   :  { %739 = vsyncadd [#allocation5], 4294963200 }
  0xee   :  { %588 = vsyncpa [#allocation4], 1 }
  0xef   :  { %589 = vsyncpa [#allocation5], 1 }

</bundles_post_ra>
